<compile_context>
chip_gen: v6e
topology: v6e:2x2x1
jax: 0.10.0
libtpu: 0.0.40
codegen_flags: <defaults>
</compile_context>

<pallas_src>
import math

import jax
import jax.numpy as jnp
from jax.experimental import pallas as pl
from jax.experimental.pallas import tpu as pltpu


def _round_up(x: int, m: int) -> int:
    return ((x + m - 1) // m) * m


def _pick_tiles(n_pad: int, d: int, in_itemsize: int, vmem_budget_bytes: int):
    """Pick (TM, TN).

    TN targets the 256-wide MXU on v6e/v7x (128 is native on v5e); TM grows as
    large as the VMEM budget allows because the text column tile is re-streamed
    from HBM n/TM times (arithmetic intensity ~ TM).  Both tiles are multiples
    of 8 and divide n_pad so the grid is exact (no remainder tiles).
    """
    divs = [x for x in range(8, n_pad + 1, 8) if n_pad % x == 0]
    tn_cands = [x for x in divs if x <= 256]
    tn_128 = [x for x in tn_cands if x % 128 == 0]
    tn = max(tn_128) if tn_128 else max(tn_cands)

    def fits(tm):
        inputs = 2 * (tm + tn) * d * in_itemsize   # double-buffered audio + text
        interm = 4 * tm * tn * 4                   # (TM,TN) f32 sims/softplus temps
        outb = 2 * 8 * tn * 4                      # (8,TN) f32 partial accumulator
        return inputs + interm + outb <= vmem_budget_bytes

    tm_cands = [x for x in divs if x <= 2048 and fits(x)]
    tm = max(tm_cands) if tm_cands else min(divs)
    return tm, tn


def _siglip_kernel(scale_ref, bias_ref, a_ref, t_ref, o_ref):
    """scale_ref/bias_ref: SMEM (L,) f32 (scale = exp(temperature)).
    a_ref: VMEM (TM, D) audio rows for this (layer, row-tile)  [constant over j].
    t_ref: VMEM (TN, D) text rows for this (layer, col-tile)   [streams over j].
    o_ref: VMEM (8, TN) f32 partial-sum accumulator, one block per (layer, row-tile).
    """
    l = pl.program_id(0)
    j = pl.program_id(2)

    scale = scale_ref[l]            # exp(temperature_l)
    bias = bias_ref[l]

    # sims tile on the MXU: contract the feature (lane) dim of both operands
    # (A @ B^T lowers straight to the MXU; no per-tile transpose pass).
    s = jax.lax.dot_general(
        a_ref[...], t_ref[...],
        dimension_numbers=(((1,), (1,)), ((), ())),
        preferred_element_type=jnp.float32)                  # (TM, TN) f32
    s = s * scale + bias

    # -logsigmoid(-s) = softplus(s) for every element, stable form.
    # (Diagonal / padding handled analytically in the wrapper.)
    # TODO(synk): optional bf16 softplus on v6e/v7x for small D (EUP-bound case).
    sp = jnp.maximum(s, 0.0) + jnp.log(1.0 + jnp.exp(-jnp.abs(s)))

    # Sublane-grouped partial reduce to an (8, TN) vreg-aligned slab:
    # pure VALU adds of (8, TN) slabs, no cross-lane XLU reduce, no scalar RMW.
    tm, tn = sp.shape
    part = sp.reshape(tm // 8, 8, tn).sum(axis=0)

    @pl.when(j == 0)
    def _():
        o_ref[...] = jnp.zeros_like(o_ref)

    o_ref[...] += part


def sigmoid_contrastive_loss(audio_latents, text_latents, temperatures, bias,
                             *, compute_dtype=jnp.bfloat16):
    """JAX/Pallas port of SigmoidContrastiveLearning.forward (single device).

    audio_latents, text_latents: (L, B, D) or (B, D)
    temperatures, bias: (layers, 1, 1) parameters (layers == L or layers == 1)
    returns: scalar f32 loss
    """
    if audio_latents.ndim == 2:
        audio_latents = audio_latents[None, ...]
    if text_latents.ndim == 2:
        text_latents = text_latents[None, ...]

    # TODO(synk): cross-device all_gather (dim=1) / rank-wise label split is not
    # implemented; single-device identity gather with full eye(n) labels.
    assert audio_latents.shape == text_latents.shape, "single-device gather"
    L, n, D = audio_latents.shape
    f32 = jnp.float32

    scales = jnp.broadcast_to(
        jnp.exp(jnp.asarray(temperatures, f32).reshape(-1)), (L,))
    bias_v = jnp.broadcast_to(jnp.asarray(bias, f32).reshape(-1), (L,))

    # Exact f32 diagonal dot products (O(L*n*D), trivially fused by XLA);
    # the diagonal (+1 label) term is folded in analytically:
    #   softplus(-s_ii) = softplus(s_ii) - s_ii.
    diag_dots = jnp.einsum('lid,lid->l',
                           audio_latents.astype(f32),
                           text_latents.astype(f32),
                           precision=jax.lax.Precision.HIGHEST)

    # Compute-dtype inputs for the kernel (bf16 by default: native MXU rate,
    # half the HBM/VMEM bytes; accumulation stays f32 inside the MXU).
    a_c = audio_latents.astype(compute_dtype)
    t_c = text_latents.astype(compute_dtype)

    # Zero-pad the batch dim to a vreg/MXU-friendly multiple.  Every padded
    # (i, j) pair has a zero dot product -> contributes exactly softplus(bias_l),
    # which is subtracted analytically below.
    base = 128 if n >= 128 else 8
    n_pad = _round_up(n, base)
    if n_pad != n:
        pad = ((0, 0), (0, n_pad - n), (0, 0))
        a_c = jnp.pad(a_c, pad)
        t_c = jnp.pad(t_c, pad)

    # Generation-aware VMEM budget (v7x: 64 MiB physical; v5e/v6e: 128 MiB;
    # default scoped limit is only 32 MiB everywhere).
    try:
        phys_vmem = pltpu.get_tpu_info().vmem_capacity_bytes
    except Exception:  # conservative default: assume the v7x 64 MiB ceiling
        phys_vmem = 64 * 1024 * 1024
    vmem_limit = min(int(phys_vmem * 3 // 4), 100 * 1024 * 1024)

    tm, tn = _pick_tiles(n_pad, D, jnp.dtype(compute_dtype).itemsize,
                         int(vmem_limit * 0.8))
    rt, ct = n_pad // tm, n_pad // tn

    partials = pl.pallas_call(
        _siglip_kernel,
        out_shape=jax.ShapeDtypeStruct((L, rt, 8, tn), jnp.float32),
        grid=(L, rt, ct),
        in_specs=[
            pl.BlockSpec(memory_space=pltpu.MemorySpace.SMEM),          # scales (L,)
            pl.BlockSpec(memory_space=pltpu.MemorySpace.SMEM),          # bias   (L,)
            pl.BlockSpec((None, tm, D), lambda l, i, j: (l, i, 0)),     # audio rows
            pl.BlockSpec((None, tn, D), lambda l, i, j: (l, j, 0)),     # text cols
        ],
        out_specs=pl.BlockSpec((None, None, 8, tn),
                               lambda l, i, j: (l, i, 0, 0)),           # per-(l,i) partials
        compiler_params=pltpu.CompilerParams(
            dimension_semantics=("parallel", "parallel", "arbitrary"),
            vmem_limit_bytes=vmem_limit),
    )(scales, bias_v, a_c, t_c)

    kernel_sum = jnp.sum(partials)

    # Analytic corrections:
    #  * padded pairs: (n_pad^2 - n^2) * softplus(bias_l) per layer
    #  * diagonal:     subtract sum_i s_ii = scale_l * diag_dots_l + n * bias_l
    sp_bias = jnp.maximum(bias_v, 0.0) + jnp.log(1.0 + jnp.exp(-jnp.abs(bias_v)))
    pad_terms = float(n_pad * n_pad - n * n) * jnp.sum(sp_bias)
    diag_terms = jnp.sum(scales * diag_dots + n * bias_v)

    return (kernel_sum - pad_terms - diag_terms) / n


def _reference_loss(audio_latents, text_latents, temperatures, bias):
    """Pure-JAX reference mirroring the PyTorch module (single device)."""
    if audio_latents.ndim == 2:
        audio_latents = audio_latents[None]
    if text_latents.ndim == 2:
        text_latents = text_latents[None]
    n = text_latents.shape[1]
    sims = jnp.einsum('lid,ljd->lij',
                      audio_latents.astype(jnp.float32),
                      text_latents.astype(jnp.float32),
                      precision=jax.lax.Precision.HIGHEST)
    sims = sims * jnp.exp(jnp.asarray(temperatures, jnp.float32)) \
        + jnp.asarray(bias, jnp.float32)
    labels = 2.0 * jnp.eye(n, dtype=jnp.float32)[None] - 1.0
    return -jax.nn.log_sigmoid(labels * sims).sum() / n


if __name__ == "__main__":
    key = jax.random.PRNGKey(0)
    k1, k2, k3, k4, k5, k6 = jax.random.split(key, 6)

    # Config 1: module defaults (layers=1, init_temp=10, init_bias=-10), tiny batch.
    layers, init_temp, init_bias = 1, 10.0, -10.0
    temperatures = jnp.ones((layers, 1, 1), jnp.float32) * math.log(init_temp)
    bias = jnp.ones((layers, 1, 1), jnp.float32) * init_bias
    L, B, D = 1, 8, 32
    audio = jax.random.normal(k1, (L, B, D), jnp.float32) * 0.1
    text = jax.random.normal(k2, (L, B, D), jnp.float32) * 0.1
    ref = _reference_loss(audio, text, temperatures, bias)

    # f32 compute path (tight tolerance).
    loss_f32 = jax.block_until_ready(sigmoid_contrastive_loss(
        audio, text, temperatures, bias, compute_dtype=jnp.float32))
    assert loss_f32.shape == ()
    assert jnp.allclose(loss_f32, ref, rtol=1e-4, atol=1e-4), (loss_f32, ref)

    # Default bf16 compute path (MXU-native inputs, f32 accumulation).
    loss_bf16 = jax.block_until_ready(
        sigmoid_contrastive_loss(audio, text, temperatures, bias))
    assert jnp.allclose(loss_bf16, ref, rtol=1e-3, atol=1e-3), (loss_bf16, ref)

    # Config 2: layers=2, multi-tile grid (exercises per-layer temperature/bias
    # indexing and the per-(layer, row-tile) accumulation path).
    temps2 = jnp.array([[[math.log(10.0)]], [[math.log(5.0)]]], jnp.float32)
    bias2 = jnp.array([[[-10.0]], [[-8.0]]], jnp.float32)
    L2, B2, D2 = 2, 24, 64
    audio2 = jax.random.normal(k3, (L2, B2, D2), jnp.float32) * 0.1
    text2 = jax.random.normal(k4, (L2, B2, D2), jnp.float32) * 0.1
    loss2 = jax.block_until_ready(
        sigmoid_contrastive_loss(audio2, text2, temps2, bias2))
    ref2 = _reference_loss(audio2, text2, temps2, bias2)
    assert jnp.allclose(loss2, ref2, rtol=1e-3, atol=1e-3), (loss2, ref2)

    # Config 3: awkward batch size (n=20 -> padded to 24), exercises the
    # analytic padding correction.
    L3, B3, D3 = 1, 20, 48
    audio3 = jax.random.normal(k5, (L3, B3, D3), jnp.float32) * 0.1
    text3 = jax.random.normal(k6, (L3, B3, D3), jnp.float32) * 0.1
    loss3 = jax.block_until_ready(
        sigmoid_contrastive_loss(audio3, text3, temperatures, bias))
    ref3 = _reference_loss(audio3, text3, temperatures, bias)
    assert jnp.allclose(loss3, ref3, rtol=1e-3, atol=1e-3), (loss3, ref3)

    print("KERNEL_OK")
</pallas_src>

<mosaic_0001>
module attributes {stable_mosaic.version = 11 : i64} {
  func.func @_siglip_kernel(%arg0: i32, %arg1: i32, %arg2: i32, %arg3: memref<1xf32, #tpu.memory_space<smem>>, %arg4: memref<1xf32, #tpu.memory_space<smem>>, %arg5: memref<1x8x32xf32, #tpu.memory_space<vmem>>, %arg6: memref<1x8x32xf32, #tpu.memory_space<vmem>>, %arg7: memref<1x1x8x8xf32, #tpu.memory_space<vmem>>) attributes {dimension_semantics = [#tpu.dimension_semantics<parallel>, #tpu.dimension_semantics<parallel>, #tpu.dimension_semantics<arbitrary>], iteration_bounds = array<i64: 1, 1, 1>, scalar_prefetch = 0 : i64, scratch_operands = 0 : i64, tpu.core_type = #tpu.core_type<tc>, window_params = [{transform_indices = @transform_0, window_bounds = array<i64: 1>}, {transform_indices = @transform_1, window_bounds = array<i64: 1>}, {transform_indices = @transform_2, window_bounds = array<i64: 1, 8, 32>}, {transform_indices = @transform_3, window_bounds = array<i64: 1, 8, 32>}, {transform_indices = @transform_4, window_bounds = array<i64: 1, 1, 8, 8>}]} {
    %0 = arith.index_cast %arg0 : i32 to index
    %1 = memref.load %arg3[%0] : memref<1xf32, #tpu.memory_space<smem>>
    %2 = arith.index_cast %arg0 : i32 to index
    %3 = memref.load %arg4[%2] : memref<1xf32, #tpu.memory_space<smem>>
    %c0 = arith.constant 0 : index
    %c0_0 = arith.constant 0 : index
    %c0_1 = arith.constant 0 : index
    %4 = vector.load %arg5[%c0, %c0_0, %c0_1] : memref<1x8x32xf32, #tpu.memory_space<vmem>>, vector<1x8x32xf32>
    %5 = vector.shape_cast %4 : vector<1x8x32xf32> to vector<8x32xf32>
    %c0_2 = arith.constant 0 : index
    %c0_3 = arith.constant 0 : index
    %c0_4 = arith.constant 0 : index
    %6 = vector.load %arg6[%c0_2, %c0_3, %c0_4] : memref<1x8x32xf32, #tpu.memory_space<vmem>>, vector<1x8x32xf32>
    %7 = vector.shape_cast %6 : vector<1x8x32xf32> to vector<8x32xf32>
    %cst = arith.constant dense<0.000000e+00> : vector<8x8xf32>
    %8 = tpu.matmul %5, %7, %cst {dimension_numbers = #tpu.dot_dimension_numbers<[1], [1], [0], [0], [0, 0, 1, 0], [], []>} : vector<8x32xf32>, vector<8x32xf32>, vector<8x8xf32> -> vector<8x8xf32>
    %9 = vector.broadcast %1 : f32 to vector<8x8xf32>
    %10 = arith.mulf %8, %9 : vector<8x8xf32>
    %11 = vector.broadcast %3 : f32 to vector<8x8xf32>
    %12 = arith.addf %10, %11 : vector<8x8xf32>
    %cst_5 = arith.constant 0.000000e+00 : f32
    %13 = vector.broadcast %cst_5 : f32 to vector<8x8xf32>
    %14 = arith.maximumf %12, %13 : vector<8x8xf32>
    %15 = math.absf %12 : vector<8x8xf32>
    %cst_6 = arith.constant 0.000000e+00 : f32
    %16 = vector.broadcast %cst_6 : f32 to vector<8x8xf32>
    %17 = arith.subf %16, %15 : vector<8x8xf32>
    %18 = math.exp %17 : vector<8x8xf32>
    %cst_7 = arith.constant 1.000000e+00 : f32
    %19 = vector.broadcast %cst_7 : f32 to vector<8x8xf32>
    %20 = arith.addf %19, %18 : vector<8x8xf32>
    %21 = math.log %20 : vector<8x8xf32>
    %22 = arith.addf %14, %21 : vector<8x8xf32>
    %23 = vector.shape_cast %22 : vector<8x8xf32> to vector<1x8x8xf32>
    %cst_8 = arith.constant dense<0.000000e+00> : vector<8x8xf32>
    %24 = vector.multi_reduction <add>, %23, %cst_8 [0] : vector<1x8x8xf32> to vector<8x8xf32>
    %c0_i32 = arith.constant 0 : i32
    %25 = arith.cmpi eq, %arg2, %c0_i32 : i32
    %26 = arith.extui %25 : i1 to i32
    %c0_i32_9 = arith.constant 0 : i32
    %27 = arith.cmpi ne, %26, %c0_i32_9 : i32
    scf.if %27 {
      %cst_18 = arith.constant 0.000000e+00 : f32
      %34 = vector.broadcast %cst_18 : f32 to vector<8x8xf32>
      %c0_19 = arith.constant 0 : index
      %c0_20 = arith.constant 0 : index
      %c0_21 = arith.constant 0 : index
      %c0_22 = arith.constant 0 : index
      %35 = vector.load %arg7[%c0_19, %c0_20, %c0_21, %c0_22] : memref<1x1x8x8xf32, #tpu.memory_space<vmem>>, vector<1x1x8x8xf32>
      %36 = vector.shape_cast %35 : vector<1x1x8x8xf32> to vector<8x8xf32>
      %37 = vector.shape_cast %34 : vector<8x8xf32> to vector<1x1x8x8xf32>
      tpu.vector_store %arg7[%c0_19, %c0_20, %c0_21, %c0_22], %37 {strides = array<i32>} : memref<1x1x8x8xf32, #tpu.memory_space<vmem>>, vector<1x1x8x8xf32>,
    } else {
    }
    %c0_10 = arith.constant 0 : index
    %c0_11 = arith.constant 0 : index
    %c0_12 = arith.constant 0 : index
    %c0_13 = arith.constant 0 : index
    %28 = vector.load %arg7[%c0_10, %c0_11, %c0_12, %c0_13] : memref<1x1x8x8xf32, #tpu.memory_space<vmem>>, vector<1x1x8x8xf32>
    %29 = vector.shape_cast %28 : vector<1x1x8x8xf32> to vector<8x8xf32>
    %30 = arith.addf %29, %24 : vector<8x8xf32>
    %c0_14 = arith.constant 0 : index
    %c0_15 = arith.constant 0 : index
    %c0_16 = arith.constant 0 : index
    %c0_17 = arith.constant 0 : index
    %31 = vector.load %arg7[%c0_14, %c0_15, %c0_16, %c0_17] : memref<1x1x8x8xf32, #tpu.memory_space<vmem>>, vector<1x1x8x8xf32>
    %32 = vector.shape_cast %31 : vector<1x1x8x8xf32> to vector<8x8xf32>
    %33 = vector.shape_cast %30 : vector<8x8xf32> to vector<1x1x8x8xf32>
    tpu.vector_store %arg7[%c0_14, %c0_15, %c0_16, %c0_17], %33 {strides = array<i32>} : memref<1x1x8x8xf32, #tpu.memory_space<vmem>>, vector<1x1x8x8xf32>,
    return
  }
  func.func @transform_0(%arg0: i32, %arg1: i32, %arg2: i32) -> i32 {
    %c0_i32 = arith.constant 0 : i32
    %c0_i32_0 = arith.constant 0 : i32
    return %c0_i32 : i32
  }
  func.func @transform_1(%arg0: i32, %arg1: i32, %arg2: i32) -> i32 {
    %c0_i32 = arith.constant 0 : i32
    %c0_i32_0 = arith.constant 0 : i32
    return %c0_i32 : i32
  }
  func.func @transform_2(%arg0: i32, %arg1: i32, %arg2: i32) -> (i32, i32, i32) {
    %c0_i32 = arith.constant 0 : i32
    %c0_i32_0 = arith.constant 0 : i32
    return %arg0, %arg1, %c0_i32 : i32, i32, i32
  }
  func.func @transform_3(%arg0: i32, %arg1: i32, %arg2: i32) -> (i32, i32, i32) {
    %c0_i32 = arith.constant 0 : i32
    %c0_i32_0 = arith.constant 0 : i32
    return %arg0, %arg2, %c0_i32 : i32, i32, i32
  }
  func.func @transform_4(%arg0: i32, %arg1: i32, %arg2: i32) -> (i32, i32, i32, i32) {
    %c0_i32 = arith.constant 0 : i32
    %c0_i32_0 = arith.constant 0 : i32
    %c0_i32_1 = arith.constant 0 : i32
    return %arg0, %arg1, %c0_i32, %c0_i32_0 : i32, i32, i32, i32
  }
}

</mosaic_0001>

<bundles_post_ra>
// kernel: tpu_custom_call.1
= control target key start
LH: loop header
LB: loop body
LE: loop exit
PB: predicated region body
PF: predicated region fallthrough
CT: control target
= control target key end

     0   :  { %11 = vsyncpa [#allocation5], 0  ;;  %s296_s0 = inlined_call_operand.<no memory space> [shape: f32[1], index: 0, kind: input, shape index: {}]   ;;  %s297_s1 = inlined_call_operand.<no memory space> [shape: f32[1], index: 1, kind: input, shape index: {}]   ;;  %s298_s2 = inlined_call_operand.hbm [shape: f32[1,8,32], index: 2, kind: input, shape index: {}]   ;;  %s299_s3 = inlined_call_operand.hbm [shape: f32[1,8,32], index: 3, kind: input, shape index: {}]   ;;  %s300_s4 = inlined_call_operand.hbm [shape: f32[1,1,8,8], index: 4, kind: output, shape index: {}]  }
   0x1   :  { %12 = vsyncpa [#allocation8], 0 }
   0x2   :  { %13 = vsyncpa [#allocation6], 0  ;;  %s249_s15 = smov [#allocation4]   ;;  %s250_s17 = smov [#allocation7]  }
   0x3   :  { %s24_s16 = sshll.u32 %s249_s15, 4  ;;  %s34_s18 = sshll.u32 %s250_s17, 4  ;;  %s25_s16 = int_to_ptr.vmem [resolvable:$true] %s24_s16  ;;  %s35_s18 = int_to_ptr.vmem [resolvable:$true] %s34_s18 }
   0x4   :  { %s191_s19 = scalar_lea.vmem %s25_s16, 128  ;;  %p196_p1 = scmp.lt.s32.totalorder %s25_s16, %s25_s16 }
   0x5   :  { %p192_p0 = scmp.ne.s32.totalorder %s25_s16, %s191_s19  ;;  %p197_p2 = scmp.lt.s32.totalorder %s191_s19, %s191_s19 }
   0x7   :  { %p198_p3 = por %p197_p2, %p196_p1 }
   0x9   :  { %p199_p4 = pnand %p198_p3, %p192_p0 }
   0xb   :  { %202 = shalt.err (!%p199_p4)
}
   0xc   :  { %27 = dma.hbm_to_vmem [thread:$0]  %s298_s2, 128, %s25_s16, [#allocation5]  }
   0xd   :  { %s211_s22 = scalar_lea.vmem %s35_s18, 128  ;;  %p216_p6 = scmp.lt.s32.totalorder %s35_s18, %s35_s18 }
   0xe   :  { %p212_p5 = scmp.ne.s32.totalorder %s35_s18, %s211_s22  ;;  %p217_p7 = scmp.lt.s32.totalorder %s211_s22, %s211_s22 }
  0x10   :  { %p218_p8 = por %p217_p7, %p216_p6 }
  0x12   :  { %p219_p9 = pnand %p218_p8, %p212_p5 }
  0x14   :  { %222 = shalt.err (!%p219_p9)
}
  0x15   :  { %37 = dma.hbm_to_vmem [thread:$0]  %s299_s3, 128, %s35_s18, [#allocation8]  }
  0x16   :  { %243 = dma.done.wait [#allocation5], 128  }
  0x17   :  { %244 = vsyncadd [#allocation5], 4294967168 }
  0x18   :  { %245 = dma.done.wait [#allocation8], 128  }
  0x19   :  { %246 = vsyncadd [#allocation8], 4294967168  ;;  %vm143_vm0 = vcmask 64512   ;;  %v251_v0 = vmov 0.0   ;;  %vm252_vm1 = vmmov 0   ;;  %vm48_vm2 = vcmask 261120  }
  0x1a   :  { %169 = vmatprep.subr.mxu0 %v251_v0  ;;  %144 = vst.msk [vmem:[#allocation9] sm:$0xff] %vm143_vm0, %v251_v0  ;;  %171 = vmatprep.mubr.msk.f32.mxu0 %vm252_vm1, %v251_v0  ;;  %v47_v1 = vld [vmem:[#allocation7] sm:$0xff]  ;;  %v46_v2 = vld [vmem:[#allocation4] sm:$0xff]  ;;  %v125_v3 = vstv %s296_s0  ;;  %v127_v5 = vstv %s297_s1  ;;  %s253_s0 = smov [#allocation9]  }
  0x1b   :  { %170 = vmatpush3.xpose.msk.msra.mxu0 %vm48_vm2, %v47_v1  ;;  %s155_s27 = sshll.u32 %s253_s0, 4  ;;  %s156_s27 = int_to_ptr.vmem [resolvable:$true] %s155_s27 }
  0x1c   :  { %s223_s1 = scalar_lea.vmem %s156_s27, 128  ;;  %p228_p11 = scmp.lt.s32.totalorder %s156_s27, %s156_s27 }
  0x1d   :  { %p224_p10 = scmp.ne.s32.totalorder %s156_s27, %s223_s1  ;;  %p229_p12 = scmp.lt.s32.totalorder %s223_s1, %s223_s1 }
  0x1e   :  { %172 = vmatmul.mubr.msk.f32.vlgmr.msra.gmra.mxu0 %vm48_vm2, %v46_v2 }
  0x1f   :  { %p230_p13 = por %p229_p12, %p228_p11 }
  0x21   :  { %v145_v17 = vld [vmem:[#allocation9] sm:$0xff]  ;;  %p231_p0 = pnand %p230_p13, %p224_p10 }
  0xde   :  { %v121_v4 = vpop.f32.mrf.mxu0 }
  0xdf   :  { %v126_v6 = vmul.f32 %v125_v3, %v121_v4 }
  0xe0   :  { %v173_v7 = vpop.f32.mrf.mxu0 }
  0xe1   :  { %v128_v8 = vadd.f32 %v127_v5, %v126_v6 }
  0xe3   :  { %v130_v9 = vand.u32 2147483647, %v128_v8  ;;  %v129_v15 = vmax.f32 %v128_v8, 0.0 }
  0xe5   :  { %v131_v10 = vsub.f32 0.0, %v130_v9 }
  0xe7   :  { %v132_v11 = vmul.f32 1.442695, %v131_v10 }
  0xe9   :  { %179 = vpow2.f32 %v132_v11 }
  0xf6   :  { %v180_v12 = vpop.eup %179 }
  0xf7   :  { %v134_v13 = vadd.f32 1.0, %v180_v12 }
  0xf9   :  { %181 = vlog2.f32 %v134_v13 }
 0x106   :  { %v182_v14 = vpop.eup %181 }
 0x107   :  { %v136_v16 = vmul.f32 0.6931472, %v182_v14 }
 0x109   :  { %v137_v18 = vadd.f32 %v136_v16, %v129_v15 }
 0x10b   :  { %v146_v19 = vadd.f32 %v145_v17, %v137_v18 }
 0x10d   :  { %148 = vst.msk [vmem:[#allocation9] sm:$0xff] %vm143_vm0, %v146_v19 }
 0x10e   :  { %234 = shalt.err (!%p231_p0)
}
 0x10f   :  { %158 = dma.vmem_to_hbm [thread:$0]  %s156_s27, 128, %s300_s4, [#allocation6]  }
 0x110   :  { %247 = dma.done.wait [#allocation6], 128  }
 0x111   :  { %248 = vsyncadd [#allocation6], 4294967168 }
 0x112   :  { %162 = vsyncpa [#allocation5], 1 }
 0x113   :  { %163 = vsyncpa [#allocation8], 1 }
 0x114   :  { %164 = vsyncpa [#allocation6], 1 }

</bundles_post_ra>
